<compile_context>
chip_gen: v7x
topology: tpu7x:2x2x1
jax: 0.10.0
libtpu: 0.0.40
codegen_flags: <defaults>
</compile_context>

<pallas_src>
import jax
import jax.numpy as jnp
from jax.experimental import pallas as pl
from jax.experimental.pallas import tpu as pltpu

_COMPUTE_DTYPE = jnp.bfloat16           # activation/weight stream dtype (f32 accumulation)
_TARGET_BLOCK_BYTES = 2 * 1024 * 1024   # activation bytes per grid step (per buffer)


def _round_up(a, m):
    return ((a + m - 1) // m) * m


def _ctc_top_kernel(xm_ref, xh_ref, w_ref, b_ref, o_ref):
    """One W-tile of the width-3 conv.

    xm_ref: (tm, C)      main activation rows, tm = tw*B, row-major over (w, b)
    xh_ref: (1, 2B, C)   2-row right halo for this tile
    w_ref:  (3, C, N)    conv taps (t, c, n), VMEM-resident
    b_ref:  (1, N)       bias (f32), VMEM-resident
    o_ref:  (tm, N)      output tile (f32)
    """
    tm = xm_ref.shape[0]
    bsz = xh_ref.shape[1] // 2          # batch size B (static)
    # (tm + 2B, C) slab covering taps (w-1, w, w+1) for every output row of the tile.
    slab = jnp.concatenate([xm_ref[...], xh_ref[0]], axis=0)
    acc = jnp.dot(slab[0:tm], w_ref[0], preferred_element_type=jnp.float32)
    acc += jnp.dot(slab[bsz:tm + bsz], w_ref[1], preferred_element_type=jnp.float32)
    acc += jnp.dot(slab[2 * bsz:tm + 2 * bsz], w_ref[2], preferred_element_type=jnp.float32)
    o_ref[...] = (acc + b_ref[...]).astype(o_ref.dtype)


@jax.jit
def ctc_top_c_forward(x, weight, bias):
    """Pallas implementation of CTCtopC.forward (eval / p=0 dropout).

    x:      (B, C_in, H, W)        float32 NCHW (PyTorch layout)
    weight: (nclasses, C_in, 1, 3) PyTorch OIHW conv weight
    bias:   (nclasses,)
    returns (W, B, nclasses)       float32
    """
    B, C_in, H, W = x.shape
    nclasses = weight.shape[0]

    # ---- tile-size selection (static, shape-driven) ----
    itemsize = jnp.dtype(_COMPUTE_DTYPE).itemsize
    row_bytes = max(B * C_in * itemsize, 1)        # bytes per W-row of activations
    tw = _TARGET_BLOCK_BYTES // row_bytes
    tw = max(8, min(2048, (tw // 8) * 8))
    tw = min(tw, _round_up(W, 8))
    if W >= 16:  # v7x megacore: guarantee >=2 grid steps so both TensorCores get work
        tw = min(tw, _round_up((W + 1) // 2, 8))
    W_pad = _round_up(W, tw)
    grid_w = W_pad // tw
    tm = tw * B                                    # collapsed (w, b) rows per grid step

    # ---- lane-dense output padding (unmasked vst) -- skip for tiny nclasses ----
    n_out = nclasses
    if nclasses >= 64 and nclasses % 128 != 0:
        n_out = _round_up(nclasses, 128)

    # ---- single fused relayout of the h=0 slice: NCHW -> (W, B, C), pad W once ----
    # pad = 1 (left conv halo) + 1 + (W_pad - W) (right conv halo + grid tail),
    # all inside one pad op fused with the transpose -> no extra activation pass.
    x0 = jnp.transpose(x[:, :, 0, :], (2, 0, 1)).astype(_COMPUTE_DTYPE)   # (W, B, C)
    xp = jnp.pad(x0, ((1, W_pad - W + 1), (0, 0), (0, 0)))                # (W_pad+2, B, C)
    xp2 = xp.reshape((W_pad + 2) * B, C_in)                               # free reshape

    # Per-tile 2-row right halo: xp rows ((i+1)*tw, (i+1)*tw + 1), i = 0..grid_w-1.
    halo = jnp.stack([xp[tw::tw], xp[tw + 1::tw]], axis=1)                # (grid_w, 2, B, C)
    halo = halo.reshape(grid_w, 2 * B, C_in)

    # Conv taps: OIHW (N, C, 1, 3) -> (3, C, N); bias stays f32.
    w_taps = jnp.transpose(weight[:, :, 0, :], (2, 1, 0)).astype(_COMPUTE_DTYPE)
    b_vec = bias.astype(jnp.float32)
    if n_out != nclasses:
        w_taps = jnp.pad(w_taps, ((0, 0), (0, 0), (0, n_out - nclasses)))
        b_vec = jnp.pad(b_vec, (0, n_out - nclasses))
    b2 = b_vec.reshape(1, n_out)

    flops = 2 * (W_pad * B) * (3 * C_in) * n_out
    bytes_accessed = ((xp2.size + halo.size + w_taps.size) * itemsize
                      + b2.size * 4 + W_pad * B * n_out * 4)
    cost = pl.CostEstimate(flops=flops, transcendentals=0, bytes_accessed=bytes_accessed)

    out2 = pl.pallas_call(
        _ctc_top_kernel,
        out_shape=jax.ShapeDtypeStruct((W_pad * B, n_out), jnp.float32),
        grid_spec=pltpu.PrefetchScalarGridSpec(
            num_scalar_prefetch=0,
            grid=(grid_w,),
            in_specs=[
                pl.BlockSpec((tm, C_in), lambda i: (i, 0)),            # main rows (tiled)
                pl.BlockSpec((1, 2 * B, C_in), lambda i: (i, 0, 0)),   # 2-row halo (tiled)
                pl.BlockSpec((3, C_in, n_out), lambda i: (0, 0, 0)),   # taps (resident)
                pl.BlockSpec((1, n_out), lambda i: (0, 0)),            # bias (resident)
            ],
            out_specs=pl.BlockSpec((tm, n_out), lambda i: (i, 0)),
        ),
        compiler_params=pltpu.CompilerParams(
            dimension_semantics=("parallel",),
            vmem_limit_bytes=32 * 1024 * 1024,
        ),
        cost_estimate=cost,
    )(xp2, halo, w_taps, b2)

    # Rows are already (w, b) row-major == the PyTorch output order; drop the grid-tail
    # rows and lane padding (both no-ops when W % tw == 0 and nclasses is unpadded).
    return out2.reshape(W_pad, B, n_out)[:W, :, :nclasses]


def _reference_forward(x, weight, bias):
    """Pure-JAX reference replicating the PyTorch module exactly (f32)."""
    y = jax.lax.conv_general_dilated(
        x, weight, window_strides=(1, 1), padding=((0, 0), (1, 1)),
        dimension_numbers=("NCHW", "OIHW", "NCHW"),
        precision=jax.lax.Precision.HIGHEST)
    y = y + bias[None, :, None, None]
    return jnp.transpose(y, (2, 3, 0, 1))[0]


if __name__ == "__main__":
    key = jax.random.PRNGKey(0)
    k_x, k_w, k_b = jax.random.split(key, 3)

    # Small shapes consistent with the module: input_size=8 channels, nclasses=16,
    # batch=2, H=2 (only h=0 is used), W=16.
    B, C_in, H, W = 2, 8, 2, 16
    nclasses = 16

    x = jax.random.normal(k_x, (B, C_in, H, W), dtype=jnp.float32)
    fan_in = C_in * 1 * 3
    bound = 1.0 / (fan_in ** 0.5)
    weight = jax.random.uniform(k_w, (nclasses, C_in, 1, 3),
                                minval=-bound, maxval=bound, dtype=jnp.float32)
    bias = jax.random.uniform(k_b, (nclasses,),
                              minval=-bound, maxval=bound, dtype=jnp.float32)

    out = jax.block_until_ready(ctc_top_c_forward(x, weight, bias))
    assert out.shape == (W, B, nclasses), out.shape

    # Tight check vs a reference fed the same bf16-rounded inputs (validates kernel math).
    x_q = x.astype(jnp.bfloat16).astype(jnp.float32)
    w_q = weight.astype(jnp.bfloat16).astype(jnp.float32)
    ref_q = _reference_forward(x_q, w_q, bias)
    assert jnp.allclose(out, ref_q, atol=1e-4, rtol=1e-4), "mismatch vs bf16-rounded reference"

    # Loose check vs the exact f32 PyTorch-equivalent reference (bf16 input rounding only).
    ref = _reference_forward(x, weight, bias)
    assert jnp.allclose(out, ref, atol=3e-2, rtol=3e-2), "mismatch vs f32 reference"

    print("KERNEL_OK")
</pallas_src>

<mosaic_0001>
module attributes {stable_mosaic.version = 11 : i64} {
  func.func @_ctc_top_kernel(%arg0: i32, %arg1: memref<16x8xbf16, #tpu.memory_space<vmem>>, %arg2: memref<1x4x8xbf16, #tpu.memory_space<vmem>>, %arg3: memref<3x8x16xbf16, #tpu.memory_space<vmem>>, %arg4: memref<1x16xf32, #tpu.memory_space<vmem>>, %arg5: memref<16x16xf32, #tpu.memory_space<vmem>>) attributes {dimension_semantics = [#tpu.dimension_semantics<parallel>], iteration_bounds = array<i64: 2>, scalar_prefetch = 0 : i64, scratch_operands = 0 : i64, tpu.core_type = #tpu.core_type<tc>, window_params = [{transform_indices = @transform_0, window_bounds = array<i64: 16, 8>}, {transform_indices = @transform_1, window_bounds = array<i64: 1, 4, 8>}, {pipeline_mode = #tpu.pipeline_mode<synchronous>, transform_indices = @transform_2, window_bounds = array<i64: 3, 8, 16>}, {pipeline_mode = #tpu.pipeline_mode<synchronous>, transform_indices = @transform_3, window_bounds = array<i64: 1, 16>}, {transform_indices = @transform_4, window_bounds = array<i64: 16, 16>}]} {
    %c0 = arith.constant 0 : index
    %c0_0 = arith.constant 0 : index
    %0 = vector.load %arg1[%c0, %c0_0] : memref<16x8xbf16, #tpu.memory_space<vmem>>, vector<16x8xbf16>
    %c0_1 = arith.constant 0 : index
    %c0_2 = arith.constant 0 : index
    %c0_3 = arith.constant 0 : index
    %1 = vector.load %arg2[%c0_1, %c0_2, %c0_3] : memref<1x4x8xbf16, #tpu.memory_space<vmem>>, vector<1x4x8xbf16>
    %2 = vector.shape_cast %1 : vector<1x4x8xbf16> to vector<4x8xbf16>
    %3 = tpu.concatenate %0, %2 in 0 : vector<16x8xbf16>, vector<4x8xbf16> -> vector<20x8xbf16>
    %4 = vector.extract_strided_slice %3 {offsets = [0, 0], sizes = [16, 8], strides = [1, 1]} : vector<20x8xbf16> to vector<16x8xbf16>
    %c0_4 = arith.constant 0 : index
    %c0_5 = arith.constant 0 : index
    %c0_6 = arith.constant 0 : index
    %5 = vector.load %arg3[%c0_4, %c0_5, %c0_6] : memref<3x8x16xbf16, #tpu.memory_space<vmem>>, vector<1x8x16xbf16>
    %6 = vector.shape_cast %5 : vector<1x8x16xbf16> to vector<8x16xbf16>
    %cst = arith.constant dense<0.000000e+00> : vector<16x16xf32>
    %7 = tpu.matmul %4, %6, %cst {dimension_numbers = #tpu.dot_dimension_numbers<[1], [0], [0], [1], [0, 0, 1, 1], [], []>} : vector<16x8xbf16>, vector<8x16xbf16>, vector<16x16xf32> -> vector<16x16xf32>
    %8 = vector.extract_strided_slice %3 {offsets = [2, 0], sizes = [16, 8], strides = [1, 1]} : vector<20x8xbf16> to vector<16x8xbf16>
    %c1 = arith.constant 1 : index
    %c0_7 = arith.constant 0 : index
    %c0_8 = arith.constant 0 : index
    %9 = vector.load %arg3[%c1, %c0_7, %c0_8] : memref<3x8x16xbf16, #tpu.memory_space<vmem>>, vector<1x8x16xbf16>
    %10 = vector.shape_cast %9 : vector<1x8x16xbf16> to vector<8x16xbf16>
    %cst_9 = arith.constant dense<0.000000e+00> : vector<16x16xf32>
    %11 = tpu.matmul %8, %10, %cst_9 {dimension_numbers = #tpu.dot_dimension_numbers<[1], [0], [0], [1], [0, 0, 1, 1], [], []>} : vector<16x8xbf16>, vector<8x16xbf16>, vector<16x16xf32> -> vector<16x16xf32>
    %12 = arith.addf %7, %11 : vector<16x16xf32>
    %13 = vector.extract_strided_slice %3 {offsets = [4, 0], sizes = [16, 8], strides = [1, 1]} : vector<20x8xbf16> to vector<16x8xbf16>
    %c2 = arith.constant 2 : index
    %c0_10 = arith.constant 0 : index
    %c0_11 = arith.constant 0 : index
    %14 = vector.load %arg3[%c2, %c0_10, %c0_11] : memref<3x8x16xbf16, #tpu.memory_space<vmem>>, vector<1x8x16xbf16>
    %15 = vector.shape_cast %14 : vector<1x8x16xbf16> to vector<8x16xbf16>
    %cst_12 = arith.constant dense<0.000000e+00> : vector<16x16xf32>
    %16 = tpu.matmul %13, %15, %cst_12 {dimension_numbers = #tpu.dot_dimension_numbers<[1], [0], [0], [1], [0, 0, 1, 1], [], []>} : vector<16x8xbf16>, vector<8x16xbf16>, vector<16x16xf32> -> vector<16x16xf32>
    %17 = arith.addf %12, %16 : vector<16x16xf32>
    %c0_13 = arith.constant 0 : index
    %c0_14 = arith.constant 0 : index
    %18 = vector.load %arg4[%c0_13, %c0_14] : memref<1x16xf32, #tpu.memory_space<vmem>>, vector<1x16xf32>
    %19 = vector.broadcast %18 : vector<1x16xf32> to vector<16x16xf32>
    %20 = arith.addf %17, %19 : vector<16x16xf32>
    %c0_15 = arith.constant 0 : index
    %c0_16 = arith.constant 0 : index
    %21 = vector.load %arg5[%c0_15, %c0_16] : memref<16x16xf32, #tpu.memory_space<vmem>>, vector<16x16xf32>
    tpu.vector_store %arg5[%c0_15, %c0_16], %20 {strides = array<i32>} : memref<16x16xf32, #tpu.memory_space<vmem>>, vector<16x16xf32>,
    return
  }
  func.func @transform_0(%arg0: i32) -> (i32, i32) {
    %c0_i32 = arith.constant 0 : i32
    %c0_i32_0 = arith.constant 0 : i32
    return %arg0, %c0_i32 : i32, i32
  }
  func.func @transform_1(%arg0: i32) -> (i32, i32, i32) {
    %c0_i32 = arith.constant 0 : i32
    %c0_i32_0 = arith.constant 0 : i32
    %c0_i32_1 = arith.constant 0 : i32
    return %arg0, %c0_i32, %c0_i32_0 : i32, i32, i32
  }
  func.func @transform_2(%arg0: i32) -> (i32, i32, i32) {
    %c0_i32 = arith.constant 0 : i32
    %c0_i32_0 = arith.constant 0 : i32
    %c0_i32_1 = arith.constant 0 : i32
    %c0_i32_2 = arith.constant 0 : i32
    return %c0_i32, %c0_i32_0, %c0_i32_1 : i32, i32, i32
  }
  func.func @transform_3(%arg0: i32) -> (i32, i32) {
    %c0_i32 = arith.constant 0 : i32
    %c0_i32_0 = arith.constant 0 : i32
    %c0_i32_1 = arith.constant 0 : i32
    return %c0_i32, %c0_i32_0 : i32, i32
  }
  func.func @transform_4(%arg0: i32) -> (i32, i32) {
    %c0_i32 = arith.constant 0 : i32
    %c0_i32_0 = arith.constant 0 : i32
    return %arg0, %c0_i32 : i32, i32
  }
}

</mosaic_0001>

<bundles_post_ra>
// kernel: ctc_top_c_forward.1
= control target key start
LH: loop header
LB: loop body
LE: loop exit
PB: predicated region body
PF: predicated region fallthrough
CT: control target
= control target key end

     0   :  { %9 = vsyncpa [#allocation3], 0  ;;  %s815_s0 = inlined_call_operand.vmem [shape: bf16[36,8], index: 0, kind: input, shape index: {}]   ;;  %s816_s1 = inlined_call_operand.vmem [shape: bf16[2,4,8], index: 1, kind: input, shape index: {}]   ;;  %s817_s2 = inlined_call_operand.vmem [shape: bf16[3,8,16], index: 2, kind: input, shape index: {}]   ;;  %s818_s3 = inlined_call_operand.vmem [shape: f32[1,16], index: 3, kind: input, shape index: {}]   ;;  %s819_s4 = inlined_call_operand.hbm [shape: f32[32,16], index: 4, kind: output, shape index: {}]  }
   0x1   :  { %11 = vsyncpa [#allocation3 + $0x1], 0  ;;  %s687_s15 = smov 0   ;;  %s689_s16 = smov 0  }
   0x2   :  { %s691_s17 = smov 0   ;;  %s693_s18 = smov 0  }
   0x3 LB: > { %s708_s19 = sadd.s32 4294967295, %s655_s18   ;;  %s504_s20 = sadd.s32 4294967294, %s655_s18   ;;  %s655_s18 = sphi %s693_s18, %s825_s18   ;;  %s651_s17 = sphi %s691_s17, %s824_s17   ;;  %s647_s16 = sphi %s689_s16, %s823_s16   ;;  %s643_s15 = sphi %s687_s15, %s822_s15  }
   0x4   : > { %s712_s21 = sadd.s32 1, %s655_s18   ;;  %s118_s22 = sadd.s32 1, %s651_s17 }
   0x5   : > { %s115_s23 = ssub.s32 %s655_s18, %s712_s21  ;;  %p128_p0 = scmp.ne.s32.totalorder %s651_s17, %s647_s16 }
   0x6   : > { %p116_p1 = scmp.eq.s32.totalorder %s115_s23, 0  ;;  %p129_p2 = scmp.eq.s32.totalorder %s708_s19, 1 }
   0x7   : > { %p134_p3 = scmp.ne.s32.totalorder %s647_s16, %s643_s15  ;;  %p135_p4 = scmp.eq.s32.totalorder %s504_s20, 1 }
   0x8   : > { %s723_s24 = scalar_select %p116_p1, %s651_s17, %s118_s22  }
   0x9   : > { %p725_p5 = por %p129_p2, %p128_p0  ;;  %p729_p6 = por %p135_p4, %p134_p3 }
   0xa   : > { %p507_p7 = scmp.ge.s32.totalorder %s655_s18, 1  ;;  %p183_p8 = scmp.lt.s32.totalorder %s655_s18, 3 }
   0xc   : > { %p184_p9 = pnand %p507_p7, %p183_p8 }
   0xd   : > { %v513_v0 = vld [vmem:[%s817_s2 + $0x4] sm:$0xf] (!%p184_p9)  ;;  %vm257_vm0 = vcmask (!%p184_p9), 1043456   ;;  %v245_v1 = vld [vmem:[%s817_s2] sm:$0xf] (!%p184_p9)  ;;  %v657_v2 = vmov (!%p184_p9), 0.0  }
   0xe   : > { %187 = sbr.rel (%p184_p9) target bundleno = 271 (0x10f), region = 36  ;;  %531 = vmatprep.subr.bf16.mxu0 (!%p184_p9), %v657_v2  ;;  %v259_v3 = vsel (!%p184_p9), %vm257_vm0, %v513_v0, 0  ;;  %537 = vmatprep.subr.bf16.mxu1 (!%p184_p9), %v657_v2  ;;  %v306_v4 = vsel (!%p184_p9), %vm257_vm0, %v245_v1, 0  ;;  %s509_s5 = sshll.u32 (!%p184_p9), %s708_s19, 1  ;;  %vm658_vm1 = vmmov (!%p184_p9), 0   ;;  %vm253_vm2 = vcmask (!%p184_p9), 64512  }
   0xf   : > { %p231_p10 = scmp.lt.s32.totalorder (!%p184_p9), %s708_s19, 1  ;;  %532 = vmatpush3.bf16.msra.mxu0 (!%p184_p9), %v259_v3  ;;  %538 = vmatpush3.bf16.msra.mxu1 (!%p184_p9), %v306_v4  ;;  %p222_p11 = scmp.lt.s32.totalorder (!%p184_p9), %s509_s5, 4  ;;  %v516_v6 = vld [vmem:[%s817_s2 + $0x8] sm:$0xf] (!%p184_p9)  ;;  %vm249_vm3 = vcmask (!%p184_p9), 1046528   ;;  %vm351_vm4 = vcmask (!%p184_p9), 1045504  }
  0x10   : > { %533 = vmatprep.mubr.msk.bf16.mxu0 (!%p184_p9), %vm658_vm1, %v657_v2  ;;  %539 = vmatprep.mubr.msk.bf16.mxu1 (!%p184_p9), %vm658_vm1, %v657_v2  ;;  %v359_v10 = vsel (!%p184_p9), %vm257_vm0, %v516_v6, 0  ;;  %s214_s23 = sand.u32 (!%p184_p9), 1, %s647_s16   ;;  %v518_v26 = vld [vmem:[%s818_s3] ss:$0 sm:$0xff] (!%p184_p9)  ;;  %vm413_vm5 = vcmask (!%p184_p9), 130048  }
  0x11   : > { %543 = vmatprep.subr.bf16.mxu0 (!%p184_p9), %v657_v2  ;;  %s508_s27 = sshll.u32 (!%p184_p9), %s214_s23, 4  ;;  %s774_s10 = scalar_lea.sflag (!%p184_p9), [#allocation3], %s214_s23 }
  0x12   : > { %s216_s30 = scalar_lea.vmem (!%p184_p9), [#allocation2], %s508_s27 }
  0x15   : > { %s232_s6 = scalar_select %p231_p10, %s708_s19, 1 }
  0x16   : > { %s827_s5 = smov (!%p222_p11, %s509_s5), 4 }
  0x17   : > { %s511_s7 = sshll.u32 %s232_s6, 1  ;;  %s510_s8 = sshll.u32 %s827_s5, 2 }
  0x18   : > { %s234_s11 = scalar_lea.vmem %s816_s1, %s511_s7  ;;  %s225_s14 = scalar_lea.vmem %s815_s0, %s510_s8 }
  0x19   : > { %v239_v5 = vld [vmem:[%s234_s11] sm:$0x3]  ;;  %s430_s5 = sshll.u32 %s216_s30, 4  ;;  %s524_s6 = sshll.u32 %s708_s19, 8  ;;  %s772_s5 = int_to_ptr.vmem [resolvable:$true] %s430_s5 }
  0x1a   : > { %v592_v7 = vld [vmem:[%s225_s14] sm:$0xff]   ;;  %v251_v8 = vrot.slane %v239_v5, 1  ;;  %v353_v12 = vrot.slane %v239_v5, 2  ;;  %s770_s9 = scalar_lea.hbm %s819_s4, %s524_s6  ;;  %s593_s19 = scalar_lea.vmem %s772_s5, 256 }
  0x1b   : > { %v250_v9 = vrot.slane %v592_v7, 1  ;;  %540 = vmatmul.mubr.msk.bf16.vlgmr.msra.gmra.mrb[0].mxu1 %vm253_vm2, %v592_v7  ;;  %v352_v13 = vrot.slane %v592_v7, 2  ;;  %p594_p12 = scmp.ne.s32.totalorder %s772_s5, %s593_s19  ;;  %s659_s11 = smov [#allocation2]  }
  0x1c   : > { %s597_s12 = sshll.u32 %s659_s11, 4  ;;  %s598_s12 = int_to_ptr.vmem [resolvable:$false] %s597_s12 }
  0x1d   : > { %v252_v11 = vsel %vm249_vm3, %v250_v9, %v251_v8  ;;  %v354_v14 = vsel %vm351_vm4, %v352_v13, %v353_v12  ;;  %p595_p13 = pnand %p594_p12, %p725_p5  ;;  %s599_s13 = scalar_lea.vmem %s598_s12, 512 }
  0x1e   : > { %534 = vmatmul.mubr.msk.bf16.vlgmr.msra.gmra.mrb[0].mxu0 %vm253_vm2, %v252_v11  ;;  %p600_p1 = scmp.lt.s32.totalorder %s772_s5, %s598_s12  ;;  %p601_p2 = scmp.lt.s32.totalorder %s599_s13, %s593_s19 }
  0x1f   : > { %544 = vmatpush3.bf16.msra.mxu0 %v359_v10  ;;  %545 = vmatprep.mubr.msk.bf16.mxu0 %vm658_vm1, %v657_v2  ;;  %p596_p0 = pneg %p595_p13 }
  0x20   : > { %p602_p3 = por %p601_p2, %p600_p1 }
  0x22   : > { %p603_p4 = pnand %p602_p3, %p596_p0 }
  0x26   : > { %546 = vmatmul.mubr.msk.bf16.vlgmr.msra.gmra.mrb[4].mxu0 %vm253_vm2, %v354_v14 }
  0xee   : > { %v342_v15 = vpop.f32.mrb[0].mxu1 }
  0xef   : > { %v541_v16 = vpop.f32.mrb[1].mxu1 }
  0xf0   : > { %v345_v17 = vpop.f32.mrb[2].mxu1 }
  0xf1   : > { %v295_v18 = vpop.f32.mrb[0].mxu0  ;;  %v542_v19 = vpop.f32.mrb[3].mxu1 }
  0xf2   : > { %v343_v20 = vadd.f32 %v342_v15, %v295_v18  ;;  %v535_v21 = vpop.f32.mrb[1].mxu0 }
  0xf3   : > { %v298_v22 = vpop.f32.mrb[2].mxu0 }
  0xf4   : > { %v346_v23 = vadd.f32 %v345_v17, %v298_v22  ;;  %v536_v24 = vpop.f32.mrb[3].mxu0 }
  0xf9   : > { %v395_v25 = vpop.f32.mrb[4].mxu0 }
  0xfa   : > { %v402_v27 = vadd.f32 %v395_v25, %v343_v20  ;;  %v547_v28 = vpop.f32.mrb[5].mxu0 }
  0xfb   : > { %v398_v29 = vpop.f32.mrb[6].mxu0 }
  0xfc   : > { %v411_v30 = vadd.f32 %v518_v26, %v402_v27  ;;  %v403_v31 = vadd.f32 %v398_v29, %v346_v23  ;;  %v548_v32 = vpop.f32.mrb[7].mxu0 }
  0xfe   : > { %414 = vst.msk [vmem:[%s216_s30] sm:$0xff] %vm413_vm5, %v411_v30  ;;  %v412_v33 = vadd.f32 %v518_v26, %v403_v31 }
 0x100   : > { %415 = vst.msk [vmem:[%s216_s30 + $0x8] sm:$0xff] %vm413_vm5, %v412_v33 }
 0x101   : > { %606 = shalt.err (!%p603_p4)
}
 0x102   : > { %s607_s14 = scalar_lea.hbm %s770_s9, 256  ;;  %s611_s23 = scalar_lea.hbm %s819_s4, 512 }
 0x103   : > { %p608_p7 = scmp.ne.s32.totalorder %s770_s9, %s607_s14  ;;  %p612_p10 = scmp.lt.u32.totalorder %s770_s9, %s819_s4 }
 0x104   : > { %p613_p11 = scmp.lt.u32.totalorder %s611_s23, %s607_s14  ;;  %p615_p13 = scmp.lt.u32.totalorder %s607_s14, %s770_s9 }
 0x105   : > { %p609_p8 = pnand %p608_p7, %p725_p5 }
 0x106   : > { %p614_p12 = por %p613_p11, %p612_p10 }
 0x107   : > { %p610_p9 = pneg %p609_p8 }
 0x108   : > { %p616_p0 = por %p615_p13, %p614_p12 }
 0x10a   : > { %p617_p1 = pnand %p616_p0, %p610_p9 }
 0x10c   : > { %620 = shalt.err (!%p617_p1)
}
 0x10d   : > { %s660_s29 = smov 128   ;;  %s661_s30 = smov 8  }
 0x10e   : > { %549 = dma.vmem_to_hbm [thread:$0]  (%p725_p5), %s772_s5, 256, %s770_s9, %s774_s10, %s660_s29, %s660_s29, %s661_s30  }
 0x10f PF: > { %p555_p2 = scmp.ge.s32.totalorder %s655_s18, 2  ;;  %s445_s6 = sand.u32 1, %s643_s15  }
 0x110   : > { %s446_s7 = scalar_lea.sflag [#allocation3], %s445_s6 }
 0x111   : > { %p552_p3 = pnand %p555_p2, %p729_p6 }
 0x113   : > { %638 = dma.done.wait (!%p552_p3), %s446_s7, 256  }
 0x114   : > { %640 = vsyncadd (!%p552_p3), %s446_s7, 4294967040  ;;  %p14_p4 = scmp.ge.s32.totalorder %s712_s21, 4   ;;  %s822_s15 = smov %s647_s16 }
 0x115   : > { %s823_s16 = smov %s651_s17  ;;  %s824_s17 = smov %s723_s24 }
 0x116   : > { %s825_s18 = smov %s712_s21  ;;  %16 = sbr.rel (!%p14_p4) target bundleno = 3 (0x3), region = 76 }
 0x11d   :  { %451 = vsyncpa [#allocation3], 1 }
 0x11e   :  { %453 = vsyncpa [#allocation3 + $0x1], 1 }

</bundles_post_ra>
